<compile_context>
chip_gen: v7x
topology: tpu7x:2x2x1
jax: 0.10.0
libtpu: 0.0.40
codegen_flags: <defaults>
</compile_context>

<pallas_src>
import functools

import jax
import jax.numpy as jnp
from jax.experimental import pallas as pl
from jax.experimental.pallas import tpu as pltpu


def _round_up(a: int, m: int) -> int:
    return pl.cdiv(a, m) * m


def _make_preemph_kernel(coef: float):
    """Batch-tiled kernel: each block covers the full time axis."""

    def kernel(x_ref, o_ref):
        n = x_ref.shape[1]
        cur = x_ref[:, pl.ds(1, n - 1)]            # x[:, 1:]
        prv = x_ref[:, pl.ds(0, n - 1)]            # x[:, :-1]
        o_ref[:, pl.ds(1, n - 1)] = cur - coef * prv
        # Reflect pad: y[:, 0] = x[:, 0] - coef * x[:, 1]
        o_ref[:, pl.ds(0, 1)] = x_ref[:, pl.ds(0, 1)] - coef * x_ref[:, pl.ds(1, 1)]

    return kernel


def _make_preemph_kernel_time_tiled(coef: float):
    """Time-tiled kernel: previous tile's last input column carried in scratch."""

    def kernel(x_ref, o_ref, carry_ref):
        t = pl.program_id(1)
        n = x_ref.shape[1]

        @pl.when(t == 0)
        def _():
            # Reflect pad: the "previous sample" of global column 0 is x[:, 1].
            carry_ref[...] = x_ref[:, pl.ds(1, 1)]

        prev0 = carry_ref[...]                      # last col of previous tile (or reflect)
        cur = x_ref[:, pl.ds(1, n - 1)]
        prv = x_ref[:, pl.ds(0, n - 1)]
        o_ref[:, pl.ds(1, n - 1)] = cur - coef * prv
        o_ref[:, pl.ds(0, 1)] = x_ref[:, pl.ds(0, 1)] - coef * prev0
        # Halo for the next time tile of this batch tile.
        carry_ref[...] = x_ref[:, pl.ds(n - 1, 1)]

    return kernel


@functools.partial(jax.jit, static_argnames=("coef", "tile_bytes"))
def pre_emphasis(x: jax.Array, coef: float = 0.97,
                 tile_bytes: int = 2 * 1024 * 1024) -> jax.Array:
    """Pallas TPU implementation of PreEmphasis.forward for 2-D input (B, T)."""
    assert x.ndim == 2, "The number of dimensions of input tensor must be 2!"
    B, T = x.shape
    assert T >= 2, "reflect pad of 1 requires T >= 2"

    itemsize = jnp.dtype(x.dtype).itemsize
    sub = {4: 8, 2: 16, 1: 32}[itemsize]            # dtype-aware packed sublane count
    b_up = _round_up(B, sub)
    max_batch_tiles = b_up // sub

    cost = pl.CostEstimate(flops=2 * B * T,
                           transcendentals=0,
                           bytes_accessed=2 * B * T * itemsize)

    # Rows per tile (multiple of the sublane count) if the time axis stays whole.
    rows_full_t = (tile_bytes // (T * itemsize)) // sub * sub

    if rows_full_t >= sub or T < 2 * 128:
        # ---- Path A: batch-only tiling; block covers the full (unpadded) T. ----
        tb_target = max(sub, min(rows_full_t, b_up))
        n_tiles = pl.cdiv(b_up, tb_target)
        # Prefer >= 4 grid steps when the batch allows it (DMA pipelining + 2 TCs).
        n_tiles = max(n_tiles, min(4, max_batch_tiles))
        tb = _round_up(pl.cdiv(b_up, n_tiles), sub)
        tb = min(tb, B)                    # never exceed the array; tb==B -> single block
        grid = (pl.cdiv(B, tb),)
        return pl.pallas_call(
            _make_preemph_kernel(float(coef)),
            out_shape=jax.ShapeDtypeStruct((B, T), x.dtype),
            grid=grid,
            in_specs=[pl.BlockSpec((tb, T), lambda i: (i, 0))],
            out_specs=pl.BlockSpec((tb, T), lambda i: (i, 0)),
            compiler_params=pltpu.CompilerParams(
                dimension_semantics=("parallel",)),
            cost_estimate=cost,
        )(x)

    # ---- Path B: long-T / small-B -> tile time too, carry halo in VMEM scratch. ----
    n_b = min(2, max_batch_tiles)                   # >= 2 batch tiles when possible (2 TCs)
    tb = min(_round_up(pl.cdiv(b_up, n_b), sub), 256)
    tb = min(tb, B)
    tt = max(128, (tile_bytes // (tb * itemsize)) // 128 * 128)
    tt = min(tt, (T // 128) * 128)                  # time block stays inside the array
    grid = (pl.cdiv(B, tb), pl.cdiv(T, tt))
    return pl.pallas_call(
        _make_preemph_kernel_time_tiled(float(coef)),
        out_shape=jax.ShapeDtypeStruct((B, T), x.dtype),
        grid=grid,
        in_specs=[pl.BlockSpec((tb, tt), lambda i, t: (i, t))],
        out_specs=pl.BlockSpec((tb, tt), lambda i, t: (i, t)),
        scratch_shapes=[pltpu.VMEM((tb, 1), x.dtype)],
        compiler_params=pltpu.CompilerParams(
            dimension_semantics=("parallel", "arbitrary")),
        cost_estimate=cost,
    )(x)


def pre_emphasis_ref(x: jax.Array, coef: float = 0.97) -> jax.Array:
    # Pure-JAX reference mirroring torch: reflect-pad left by 1, conv with [-coef, 1.0].
    x_pad = jnp.concatenate([x[:, 1:2], x], axis=1)
    return x_pad[:, 1:] - coef * x_pad[:, :-1]


if __name__ == "__main__":
    key = jax.random.PRNGKey(0)
    k0, k1 = jax.random.split(key)

    # Main case: T=200 deliberately not a multiple of 128, B=4 not a multiple of 8.
    B, T = 4, 200
    x = jax.random.normal(k0, (B, T), dtype=jnp.float32)
    y = jax.block_until_ready(pre_emphasis(x, coef=0.97))
    assert y.shape == (B, T) and y.dtype == jnp.float32
    assert jnp.allclose(y, pre_emphasis_ref(x, 0.97), atol=1e-6, rtol=1e-6)

    # Exercise the time-tiled (long-audio) path by forcing a tiny tile budget:
    # ragged batch tiles + carried halo across 5 sequential time tiles.
    B2, T2 = 12, 520
    x2 = jax.random.normal(k1, (B2, T2), dtype=jnp.float32)
    y2 = jax.block_until_ready(pre_emphasis(x2, coef=0.97, tile_bytes=4096))
    assert jnp.allclose(y2, pre_emphasis_ref(x2, 0.97), atol=1e-6, rtol=1e-6)

    print("KERNEL_OK")
</pallas_src>

<mosaic_0001>
module attributes {stable_mosaic.version = 11 : i64} {
  func.func @kernel(%arg0: i32, %arg1: memref<4x200xf32, #tpu.memory_space<vmem>>, %arg2: memref<4x200xf32, #tpu.memory_space<vmem>>) attributes {dimension_semantics = [#tpu.dimension_semantics<parallel>], iteration_bounds = array<i64: 1>, scalar_prefetch = 0 : i64, scratch_operands = 0 : i64, tpu.core_type = #tpu.core_type<tc>, window_params = [{transform_indices = @transform_0, window_bounds = array<i64: 4, 200>}, {transform_indices = @transform_1, window_bounds = array<i64: 4, 200>}]} {
    %c0 = arith.constant 0 : index
    %c1 = arith.constant 1 : index
    %0 = vector.load %arg1[%c0, %c1] : memref<4x200xf32, #tpu.memory_space<vmem>>, vector<4x199xf32>
    %c0_0 = arith.constant 0 : index
    %c0_1 = arith.constant 0 : index
    %1 = vector.load %arg1[%c0_0, %c0_1] : memref<4x200xf32, #tpu.memory_space<vmem>>, vector<4x199xf32>
    %cst = arith.constant 9.700000e-01 : f32
    %2 = vector.broadcast %cst : f32 to vector<4x199xf32>
    %3 = arith.mulf %2, %1 : vector<4x199xf32>
    %4 = arith.subf %0, %3 : vector<4x199xf32>
    %c0_2 = arith.constant 0 : index
    %c1_3 = arith.constant 1 : index
    %5 = vector.load %arg2[%c0_2, %c1_3] : memref<4x200xf32, #tpu.memory_space<vmem>>, vector<4x199xf32>
    tpu.vector_store %arg2[%c0_2, %c1_3], %4 {strides = array<i32>} : memref<4x200xf32, #tpu.memory_space<vmem>>, vector<4x199xf32>,
    %c0_4 = arith.constant 0 : index
    %c0_5 = arith.constant 0 : index
    %6 = vector.load %arg1[%c0_4, %c0_5] : memref<4x200xf32, #tpu.memory_space<vmem>>, vector<4x1xf32>
    %c0_6 = arith.constant 0 : index
    %c1_7 = arith.constant 1 : index
    %7 = vector.load %arg1[%c0_6, %c1_7] : memref<4x200xf32, #tpu.memory_space<vmem>>, vector<4x1xf32>
    %cst_8 = arith.constant 9.700000e-01 : f32
    %8 = vector.broadcast %cst_8 : f32 to vector<4x1xf32>
    %9 = arith.mulf %8, %7 : vector<4x1xf32>
    %10 = arith.subf %6, %9 : vector<4x1xf32>
    %c0_9 = arith.constant 0 : index
    %c0_10 = arith.constant 0 : index
    %11 = vector.load %arg2[%c0_9, %c0_10] : memref<4x200xf32, #tpu.memory_space<vmem>>, vector<4x1xf32>
    tpu.vector_store %arg2[%c0_9, %c0_10], %10 {strides = array<i32>} : memref<4x200xf32, #tpu.memory_space<vmem>>, vector<4x1xf32>,
    return
  }
  func.func @transform_0(%arg0: i32) -> (i32, i32) {
    %c0_i32 = arith.constant 0 : i32
    %c0_i32_0 = arith.constant 0 : i32
    return %arg0, %c0_i32 : i32, i32
  }
  func.func @transform_1(%arg0: i32) -> (i32, i32) {
    %c0_i32 = arith.constant 0 : i32
    %c0_i32_0 = arith.constant 0 : i32
    return %arg0, %c0_i32 : i32, i32
  }
}

</mosaic_0001>

<bundles_post_ra>
// kernel: pre_emphasis.1
= control target key start
LH: loop header
LB: loop body
LE: loop exit
PB: predicated region body
PF: predicated region fallthrough
CT: control target
= control target key end

     0   :  { %6 = vsyncpa [#allocation3], 0  ;;  %s149_s0 = inlined_call_operand.hbm [shape: f32[4,200], index: 0, kind: input, shape index: {}]   ;;  %s150_s1 = inlined_call_operand.hbm [shape: f32[4,200], index: 1, kind: output, shape index: {}]  }
   0x1   :  { %7 = vsyncpa [#allocation4], 0  ;;  %s111_s6 = smov [#allocation2]   ;;  %s63_s10 = scalar_lea.hbm %s149_s0, 128 }
   0x2   :  { %s14_s7 = sshll.u32 %s111_s6, 4  ;;  %p64_p0 = scmp.ne.s32.totalorder %s149_s0, %s63_s10  ;;  %s15_s7 = int_to_ptr.vmem [resolvable:$true] %s14_s7 }
   0x3   :  { %p67_p1 = scmp.lt.u32.totalorder %s63_s10, %s149_s0 }
   0x5   :  { %p69_p2 = pnand %p67_p1, %p64_p0 }
   0x7   :  { %72 = shalt.err (!%p69_p2)
}
   0x8   :  { %s73_s15 = scalar_lea.vmem %s15_s7, 128  ;;  %p78_p4 = scmp.lt.s32.totalorder %s15_s7, %s15_s7 }
   0x9   :  { %p74_p3 = scmp.ne.s32.totalorder %s15_s7, %s73_s15  ;;  %p79_p5 = scmp.lt.s32.totalorder %s73_s15, %s73_s15 }
   0xb   :  { %p80_p6 = por %p79_p5, %p78_p4 }
   0xd   :  { %p81_p7 = pnand %p80_p6, %p74_p3 }
   0xf   :  { %84 = shalt.err (!%p81_p7)
}
  0x10   :  { %17 = dma.hbm_to_vmem [thread:$0]  %s149_s0, 128, %s15_s7, [#allocation3]  }
  0x11   :  { %107 = dma.done.wait [#allocation3], 128  }
  0x12   :  { %108 = vsyncadd [#allocation3], 4294967168  ;;  %v21_v0 = vld [vmem:[#allocation2] sm:$0xff]  ;;  %s112_s18 = smov 1   ;;  %s113_s19 = smov 127   ;;  %vm27_vm0 = vcmask 7168  }
  0x13   :  { %v35_v1 = vld [vmem:[#allocation2] sm:$0xf]  ;;  %v22_v2 = vmul.f32 0.97, %v21_v0  ;;  %vm31_vm1 = vcmask 1043464   ;;  %vm32_vm2 = vcmask 588804  }
  0x14   :  { %v36_v3 = vmul.f32 0.97, %v35_v1  ;;  %s114_s20 = smov [#allocation5]   ;;  %vm33_vm3 = vmor %vm32_vm2, %vm31_vm1  ;;  %vm42_vm4 = vcmask 3072  }
  0x15   :  { %24 = vrot.lane.b32.xlu0 %v22_v2, %s112_s18  ;;  %s50_s21 = sshll.u32 %s114_s20, 4  ;;  %s51_s21 = int_to_ptr.vmem [resolvable:$true] %s50_s21 }
  0x16   :  { %s85_s0 = scalar_lea.vmem %s51_s21, 128  ;;  %p90_p9 = scmp.lt.s32.totalorder %s51_s21, %s51_s21 }
  0x17   :  { %p86_p8 = scmp.ne.s32.totalorder %s51_s21, %s85_s0  ;;  %p91_p10 = scmp.lt.s32.totalorder %s85_s0, %s85_s0 }
  0x19   :  { %38 = vrot.lane.b32.xlu0 %v36_v3, %s113_s19  ;;  %p92_p11 = por %p91_p10, %p90_p9 }
  0x1b   :  { %p93_p12 = pnand %p92_p11, %p86_p8 }
  0x87   :  { %v25_v4 = vpop.permute.xlu0 %24 }
  0x88   :  { %v26_v5 = vrot.slane %v25_v4, 4 }
  0x8a   :  { %v28_v6 = vsel %vm27_vm0, %v26_v5, %v25_v4 }
  0x8b   :  { %v30_v7 = vsub.f32 %v21_v0, %v28_v6  ;;  %v39_v8 = vpop.permute.xlu0 %38 }
  0x8c   :  { %v41_v9 = vsub.f32 %v35_v1, %v39_v8 }
  0x8d   :  { %34 = vst.msk [vmem:[#allocation5] sm:$0xff] %vm33_vm3, %v30_v7 }
  0x8e   :  { %43 = vst.msk [vmem:[#allocation5] sm:$0xf] %vm42_vm4, %v41_v9 }
  0x8f   :  { %96 = shalt.err (!%p93_p12)
}
  0x90   :  { %s97_s24 = scalar_lea.hbm %s150_s1, 128 }
  0x91   :  { %p98_p13 = scmp.ne.s32.totalorder %s150_s1, %s97_s24  ;;  %p101_p0 = scmp.lt.u32.totalorder %s97_s24, %s150_s1 }
  0x93   :  { %p103_p1 = pnand %p101_p0, %p98_p13 }
  0x95   :  { %106 = shalt.err (!%p103_p1)
}
  0x96   :  { %53 = dma.vmem_to_hbm [thread:$0]  %s51_s21, 128, %s150_s1, [#allocation4]  }
  0x97   :  { %109 = dma.done.wait [#allocation4], 128  }
  0x98   :  { %110 = vsyncadd [#allocation4], 4294967168 }
  0x99   :  { %57 = vsyncpa [#allocation3], 1 }
  0x9a   :  { %58 = vsyncpa [#allocation4], 1 }

</bundles_post_ra>
